<compile_context>
chip_gen: v6e
topology: v6e:2x2x1
jax: 0.10.0
libtpu: 0.0.40
codegen_flags: <defaults>
</compile_context>

<pallas_src>
import jax
import jax.numpy as jnp
from jax.experimental import pallas as pl
from jax.experimental.pallas import tpu as pltpu

_MIB = 1024 * 1024


def _cdiv(a, b):
    return -(-a // b)


def _round_up(x, m):
    return _cdiv(x, m) * m


def _vmem_capacity_bytes():
    """Physical VMEM of the attached TPU (per TensorCore); conservative fallback."""
    try:
        info = pltpu.get_tpu_info()
        cap = getattr(info, "vmem_capacity_bytes", None)
        if cap:
            return int(cap)
    except Exception:
        pass
    return 64 * _MIB  # v7x-safe default


def _spatial_bottleneck_kernel(x_ref, w_ref, b_ref, o_ref):
    # x_ref: (B, S, C_in) ; w_ref: (C_in, C_out) ; b_ref: (1, C_out) f32
    # o_ref: (B, C_out)
    blk_b, s, c_in = x_ref.shape
    # One large MXU matmul over all B*S pixel rows of this tile.
    # Reshape is layout-preserving because s % 8 == 0 and c_in % 128 == 0.
    x2d = x_ref[...].reshape(blk_b * s, c_in)
    y = jnp.dot(x2d, w_ref[...],
                preferred_element_type=jnp.float32)      # (B*S, C_out) f32 acc
    y = y.reshape(blk_b, s, -1)                          # (B, S, C_out)
    # AdaptiveMaxPool2d(1): max over spatial positions; bias added after the max
    # since max_s(y[s] + b) == max_s(y[s]) + b.
    pooled = jnp.max(y, axis=1)                          # (B, C_out)
    o_ref[...] = (pooled + b_ref[...]).astype(o_ref.dtype)


def spatial_bottleneck_forward(x, weight, bias, *, batch_size, input_size,
                               bottleneck_size, spatial_size,
                               compute_dtype=jnp.bfloat16,
                               channels_last=False,
                               block_samples=None,
                               vmem_budget_bytes=None,
                               vmem_limit_bytes=None):
    """x: reshapeable to (-1, input_size, spatial_size, spatial_size) (NCHW, as
    in PyTorch), or NHWC if channels_last=True.  weight: (C_out, C_in, 1, 1),
    bias: (C_out,).  compute_dtype controls the MXU datapath; accumulation and
    the returned dtype stay f32 (== x.dtype)."""
    out_dtype = x.dtype
    s = spatial_size * spatial_size
    compute_dtype = jnp.dtype(compute_dtype if compute_dtype is not None else x.dtype)

    # --- glue (plain JAX): dtype + layout conversion -------------------------
    # Cast BEFORE the transpose so the materialized NCHW->NSC copy moves
    # compute-dtype bytes (2 B/elem for bf16) instead of f32; XLA fuses the
    # convert + transpose (+ pad) into one copy fusion.
    # TODO(synk): if the upstream producer can emit channels-last activations,
    # pass channels_last=True and this extra HBM pass disappears entirely.
    if channels_last:
        x_nhwc = x.reshape(-1, spatial_size, spatial_size,
                           input_size).astype(compute_dtype)
    else:
        x_nchw = x.reshape(-1, input_size, spatial_size,
                           spatial_size).astype(compute_dtype)
        x_nhwc = jnp.transpose(x_nchw, (0, 2, 3, 1))
    n = x_nhwc.shape[0]
    x_nsc = x_nhwc.reshape(n, s, input_size)                           # (N, S, C_in)

    w_ck = weight.reshape(bottleneck_size, input_size).T.astype(compute_dtype)  # (C_in, C_out)
    b_2d = bias.reshape(1, bottleneck_size).astype(jnp.float32)                 # (1, C_out)

    x_itemsize = jnp.dtype(compute_dtype).itemsize
    out_itemsize = jnp.dtype(out_dtype).itemsize

    # Pad S up to a sublane multiple; edge replication does not change the max
    # and keeps the in-kernel (B,S,C)->(B*S,C) reshape layout-preserving.
    s_pad = _round_up(s, 8)
    if s_pad != s:
        x_nsc = jnp.pad(x_nsc, ((0, 0), (0, s_pad - s), (0, 0)), mode='edge')

    # --- per-generation VMEM budget ------------------------------------------
    if vmem_budget_bytes is None or vmem_limit_bytes is None:
        vmem_cap = _vmem_capacity_bytes()
        if vmem_cap >= 96 * _MIB:          # v5e / v6e: 128 MiB physical VMEM
            default_budget, default_limit = 48 * _MIB, 80 * _MIB
        else:                              # v7x: 64 MiB per TC (or unknown)
            default_budget, default_limit = 20 * _MIB, 32 * _MIB
        vmem_budget_bytes = vmem_budget_bytes or default_budget
        vmem_limit_bytes = vmem_limit_bytes or default_limit

    # --- samples per grid step ------------------------------------------------
    # Tracked VMEM per sample: double-buffered x tile + f32 matmul intermediate
    # + double-buffered output row.  Constant: double-buffered weight + bias.
    per_sample = (2 * s_pad * input_size * x_itemsize
                  + s_pad * bottleneck_size * 4
                  + 2 * bottleneck_size * out_itemsize)
    const_bytes = 2 * (input_size * bottleneck_size * x_itemsize
                       + bottleneck_size * 4)
    if block_samples is not None:
        blk_b = int(block_samples)
    elif n <= 8:
        blk_b = n                          # single step; block == full padded dim
    else:
        cap = (vmem_budget_bytes - const_bytes) // per_sample
        cap = max(8, min(256, cap))
        cap = (cap // 8) * 8               # sublane-aligned output block
        # Guarantee >= 2 grid steps so both v7x TensorCores get work.
        cap = min(cap, max(8, (_cdiv(n, 2) // 8) * 8))
        # Minimize N padding for the resulting number of steps.
        n_steps = _cdiv(n, cap)
        blk_b = _round_up(_cdiv(n, n_steps), 8)

    n_pad = _round_up(n, blk_b)
    if n_pad != n:
        # Zero padding (cheapest copy); padded rows are computed then sliced off.
        x_nsc = jnp.pad(x_nsc, ((0, n_pad - n), (0, 0), (0, 0)))

    grid = (n_pad // blk_b,)

    cost = pl.CostEstimate(
        flops=2 * n_pad * s_pad * input_size * bottleneck_size,
        transcendentals=0,
        bytes_accessed=(n_pad * s_pad * input_size * x_itemsize
                        + input_size * bottleneck_size * x_itemsize
                        + bottleneck_size * 4
                        + n_pad * bottleneck_size * out_itemsize),
    )

    # --- hot path: Pallas kernel ----------------------------------------------
    out = pl.pallas_call(
        _spatial_bottleneck_kernel,
        out_shape=jax.ShapeDtypeStruct((n_pad, bottleneck_size), out_dtype),
        grid_spec=pltpu.PrefetchScalarGridSpec(
            num_scalar_prefetch=0,
            grid=grid,
            in_specs=[
                pl.BlockSpec((blk_b, s_pad, input_size), lambda i: (i, 0, 0)),
                # Weight/bias: constant block index -> DMA'd once, VMEM-resident
                # (their double-buffer bytes are folded into the budget above).
                pl.BlockSpec((input_size, bottleneck_size), lambda i: (0, 0)),
                pl.BlockSpec((1, bottleneck_size), lambda i: (0, 0)),
            ],
            out_specs=pl.BlockSpec((blk_b, bottleneck_size), lambda i: (i, 0)),
        ),
        compiler_params=pltpu.CompilerParams(
            dimension_semantics=("parallel",),
            vmem_limit_bytes=int(vmem_limit_bytes)),
        cost_estimate=cost,
    )(x_nsc, w_ck, b_2d)

    # --- glue: drop padding, final view(batch_size, -1, bottleneck_size) ------
    out = out[:n]
    return out.reshape(batch_size, -1, bottleneck_size)


def _reference(x, weight, bias, *, batch_size, input_size, bottleneck_size,
               spatial_size):
    x = x.reshape(-1, input_size, spatial_size, spatial_size)
    w = weight.reshape(bottleneck_size, input_size)
    y = jnp.einsum('nchw,oc->nohw', x, w) + bias[None, :, None, None]
    y = jnp.max(y, axis=(2, 3))
    return y.reshape(batch_size, -1, bottleneck_size)


if __name__ == "__main__":
    # Small, MXU/vreg-friendly shapes consistent with the module's forward.
    batch_size = 2          # lfd_params.batch_size
    segments = 4            # extra leading factor absorbed by view(-1, ...)
    input_size = 128        # C_in  (module default is 2048)
    bottleneck_size = 128   # C_out (module default is 128)
    spatial_size = 8        # H = W (module default is 7)

    key = jax.random.PRNGKey(0)
    kx, kw, kb = jax.random.split(key, 3)

    # Input in the PyTorch NCHW convention.
    x = jax.random.normal(
        kx, (batch_size * segments, input_size, spatial_size, spatial_size),
        dtype=jnp.float32)
    # Conv2d(1x1) parameters: weight (C_out, C_in, 1, 1), bias (C_out,)
    weight = jax.random.normal(
        kw, (bottleneck_size, input_size, 1, 1), dtype=jnp.float32) * 0.02
    bias = jax.random.normal(kb, (bottleneck_size,), dtype=jnp.float32) * 0.1

    kwargs = dict(batch_size=batch_size, input_size=input_size,
                  bottleneck_size=bottleneck_size, spatial_size=spatial_size)

    ref = _reference(x, weight, bias, **kwargs)

    # Default path: bf16 MXU datapath with f32 accumulation (bandwidth-optimal).
    out_bf16 = jax.block_until_ready(
        spatial_bottleneck_forward(x, weight, bias, **kwargs))
    assert out_bf16.shape == (batch_size, segments, bottleneck_size), out_bf16.shape
    assert jnp.allclose(out_bf16, ref, atol=3e-2, rtol=3e-2), \
        "bf16 path mismatch vs reference"

    # Strict f32 datapath: exact check of the kernel structure.
    out_f32 = jax.block_until_ready(
        spatial_bottleneck_forward(x, weight, bias,
                                   compute_dtype=jnp.float32, **kwargs))
    assert out_f32.shape == (batch_size, segments, bottleneck_size), out_f32.shape
    assert jnp.allclose(out_f32, ref, atol=1e-4, rtol=1e-4), \
        "f32 path mismatch vs reference"

    print("KERNEL_OK")
</pallas_src>

<mosaic_0001>
module attributes {stable_mosaic.version = 11 : i64} {
  func.func @_spatial_bottleneck_kernel(%arg0: i32, %arg1: memref<8x64x128xbf16, #tpu.memory_space<vmem>>, %arg2: memref<128x128xbf16, #tpu.memory_space<vmem>>, %arg3: memref<1x128xf32, #tpu.memory_space<vmem>>, %arg4: memref<8x128xf32, #tpu.memory_space<vmem>>) attributes {dimension_semantics = [#tpu.dimension_semantics<parallel>], iteration_bounds = array<i64: 1>, scalar_prefetch = 0 : i64, scratch_operands = 0 : i64, tpu.core_type = #tpu.core_type<tc>, window_params = [{transform_indices = @transform_0, window_bounds = array<i64: 8, 64, 128>}, {pipeline_mode = #tpu.pipeline_mode<synchronous>, transform_indices = @transform_1, window_bounds = array<i64: 128, 128>}, {pipeline_mode = #tpu.pipeline_mode<synchronous>, transform_indices = @transform_2, window_bounds = array<i64: 1, 128>}, {transform_indices = @transform_3, window_bounds = array<i64: 8, 128>}]} {
    %c0 = arith.constant 0 : index
    %c0_0 = arith.constant 0 : index
    %c0_1 = arith.constant 0 : index
    %0 = vector.load %arg1[%c0, %c0_0, %c0_1] : memref<8x64x128xbf16, #tpu.memory_space<vmem>>, vector<8x64x128xbf16>
    %1 = vector.shape_cast %0 : vector<8x64x128xbf16> to vector<512x128xbf16>
    %c0_2 = arith.constant 0 : index
    %c0_3 = arith.constant 0 : index
    %2 = vector.load %arg2[%c0_2, %c0_3] : memref<128x128xbf16, #tpu.memory_space<vmem>>, vector<128x128xbf16>
    %cst = arith.constant dense<0.000000e+00> : vector<512x128xf32>
    %3 = tpu.matmul %1, %2, %cst {dimension_numbers = #tpu.dot_dimension_numbers<[1], [0], [0], [1], [0, 0, 1, 1], [], []>} : vector<512x128xbf16>, vector<128x128xbf16>, vector<512x128xf32> -> vector<512x128xf32>
    %4 = vector.shape_cast %3 : vector<512x128xf32> to vector<8x64x128xf32>
    %cst_4 = arith.constant dense<0xFF800000> : vector<8x128xf32>
    %5 = vector.multi_reduction <maximumf>, %4, %cst_4 [1] : vector<8x64x128xf32> to vector<8x128xf32>
    %c0_5 = arith.constant 0 : index
    %c0_6 = arith.constant 0 : index
    %6 = vector.load %arg3[%c0_5, %c0_6] : memref<1x128xf32, #tpu.memory_space<vmem>>, vector<1x128xf32>
    %7 = vector.broadcast %6 : vector<1x128xf32> to vector<8x128xf32>
    %8 = arith.addf %5, %7 : vector<8x128xf32>
    %c0_7 = arith.constant 0 : index
    %c0_8 = arith.constant 0 : index
    %9 = vector.load %arg4[%c0_7, %c0_8] : memref<8x128xf32, #tpu.memory_space<vmem>>, vector<8x128xf32>
    tpu.vector_store %arg4[%c0_7, %c0_8], %8 {strides = array<i32>} : memref<8x128xf32, #tpu.memory_space<vmem>>, vector<8x128xf32>,
    return
  }
  func.func @transform_0(%arg0: i32) -> (i32, i32, i32) {
    %c0_i32 = arith.constant 0 : i32
    %c0_i32_0 = arith.constant 0 : i32
    %c0_i32_1 = arith.constant 0 : i32
    return %arg0, %c0_i32, %c0_i32_0 : i32, i32, i32
  }
  func.func @transform_1(%arg0: i32) -> (i32, i32) {
    %c0_i32 = arith.constant 0 : i32
    %c0_i32_0 = arith.constant 0 : i32
    %c0_i32_1 = arith.constant 0 : i32
    return %c0_i32, %c0_i32_0 : i32, i32
  }
  func.func @transform_2(%arg0: i32) -> (i32, i32) {
    %c0_i32 = arith.constant 0 : i32
    %c0_i32_0 = arith.constant 0 : i32
    %c0_i32_1 = arith.constant 0 : i32
    return %c0_i32, %c0_i32_0 : i32, i32
  }
  func.func @transform_3(%arg0: i32) -> (i32, i32) {
    %c0_i32 = arith.constant 0 : i32
    %c0_i32_0 = arith.constant 0 : i32
    return %arg0, %c0_i32 : i32, i32
  }
}

</mosaic_0001>

<bundles_post_ra>
// kernel: tpu_custom_call.1
= control target key start
LH: loop header
LB: loop body
LE: loop exit
PB: predicated region body
PF: predicated region fallthrough
CT: control target
= control target key end

     0   :  { %8 = vsyncpa [#allocation3], 0  ;;  %s1165_s0 = inlined_call_operand.hbm [shape: bf16[8,64,128], index: 0, kind: input, shape index: {}]   ;;  %s1166_s1 = inlined_call_operand.hbm [shape: bf16[128,128], index: 1, kind: input, shape index: {}]   ;;  %s1167_s2 = inlined_call_operand.vmem [shape: f32[1,128], index: 2, kind: input, shape index: {}]   ;;  %s1168_s3 = inlined_call_operand.hbm [shape: f32[8,128], index: 3, kind: output, shape index: {}]  }
   0x1   :  { %9 = vsyncpa [#allocation6], 0 }
   0x2   :  { %10 = vsyncpa [#allocation4], 0  ;;  %s1107_s12 = smov [#allocation2]  }
   0x3   :  { %s16_s13 = sshll.u32 %s1107_s12, 4  ;;  %s17_s13 = int_to_ptr.vmem [resolvable:$true] %s16_s13 }
   0x4   :  { %s1049_s14 = scalar_lea.vmem %s17_s13, 4096  ;;  %p1054_p1 = scmp.lt.s32.totalorder %s17_s13, %s17_s13 }
   0x5   :  { %p1050_p0 = scmp.ne.s32.totalorder %s17_s13, %s1049_s14  ;;  %p1055_p2 = scmp.lt.s32.totalorder %s1049_s14, %s1049_s14 }
   0x7   :  { %p1056_p3 = por %p1055_p2, %p1054_p1 }
   0x9   :  { %p1057_p4 = pnand %p1056_p3, %p1050_p0 }
   0xb   :  { %1060 = shalt.err (!%p1057_p4)
}
   0xc   :  { %s1108_s15 = smov 64   ;;  %s1109_s16 = smov 4  }
   0xd   :  { %22 = dma.hbm_to_vmem [thread:$0]  %s1165_s0, 4096, %s17_s13, [#allocation3], %s1108_s15, %s1108_s15, %s1109_s16  }
   0xe   :  { %s1110_s19 = smov [#allocation5]  }
   0xf   :  { %s28_s20 = sshll.u32 %s1110_s19, 4  ;;  %s29_s20 = int_to_ptr.vmem [resolvable:$true] %s28_s20 }
  0x10   :  { %s1069_s21 = scalar_lea.vmem %s29_s20, 1024  ;;  %p1074_p6 = scmp.lt.s32.totalorder %s29_s20, %s29_s20 }
  0x11   :  { %p1070_p5 = scmp.ne.s32.totalorder %s29_s20, %s1069_s21  ;;  %p1075_p7 = scmp.lt.s32.totalorder %s1069_s21, %s1069_s21 }
  0x13   :  { %p1076_p8 = por %p1075_p7, %p1074_p6 }
  0x15   :  { %p1077_p9 = pnand %p1076_p8, %p1070_p5 }
  0x17   :  { %1080 = shalt.err (!%p1077_p9)
}
  0x18   :  { %34 = dma.hbm_to_vmem [thread:$0]  %s1166_s1, 1024, %s29_s20, [#allocation6], %s1108_s15, %s1108_s15, %s1109_s16  }
  0x19   :  { %1101 = dma.done.wait [#allocation3], 4096  }
  0x1a   :  { %1102 = vsyncadd [#allocation3], 4294963200 }
  0x1b   :  { %1103 = dma.done.wait [#allocation6], 1024  }
  0x1c   :  { %1104 = vsyncadd [#allocation6], 4294966272  ;;  %v1001_v0 = vld [vmem:[#allocation5 + $0x38] sm:$0xff]   ;;  %v1002_v1 = vld [vmem:[#allocation5 + $0x30] sm:$0xff]   ;;  %vm781_vm0 = vcmask 1041409   ;;  %vm784_vm1 = vcmask 1042434  }
  0x1d   :  { %900 = vmatprep.subr.bf16.mxu0 %v1001_v0  ;;  %980 = vmatprep.subr.bf16.mxu1 %v1001_v0  ;;  %v1003_v2 = vld [vmem:[#allocation5 + $0x28] sm:$0xff]   ;;  %v1004_v3 = vld [vmem:[#allocation5 + $0x20] sm:$0xff]   ;;  %v1005_v6 = vld [vmem:[#allocation5 + $0x18] sm:$0xff]   ;;  %vm787_vm2 = vcmask 1043459   ;;  %vm790_vm3 = vcmask 1044484   ;;  %vm793_vm4 = vcmask 1045509  }
  0x1e   :  { %901 = vmatpush3.bf16.msra.mxu0 %v1001_v0  ;;  %988 = vmatpush3.bf16.msra.mxu1 %v1001_v0  ;;  %v1009_v4 = vld [vmem:[#allocation2] sm:$0xff]   ;;  %v1006_v7 = vld [vmem:[#allocation5 + $0x10] sm:$0xff]   ;;  %v1007_v8 = vld [vmem:[#allocation5 + $0x8] sm:$0xff]   ;;  %vm796_vm5 = vcmask 1046534   ;;  %vm799_vm6 = vcmask 1047559  }
  0x1f   :  { %902 = vmatprep.subr.bf16.mxu0 %v1002_v1  ;;  %981 = vmatprep.subr.bf16.mxu1 %v1002_v1  ;;  %v1010_v5 = vld [vmem:[#allocation2 + $0x80] sm:$0xff]   ;;  %v1011_v10 = vld [vmem:[#allocation2 + $0x8] sm:$0xff]   ;;  %v1013_v12 = vld [vmem:[#allocation2 + $0x10] sm:$0xff]  }
  0x20   :  { %916 = vmatprep.mubr.bf16.mxu0 %v1009_v4  ;;  %948 = vmatprep.mubr.bf16.mxu1 %v1010_v5  ;;  %v1008_v9 = vld [vmem:[#allocation5] sm:$0xff]   ;;  %v1012_v11 = vld [vmem:[#allocation2 + $0x88] sm:$0xff]   ;;  %v1014_v13 = vld [vmem:[#allocation2 + $0x90] sm:$0xff]  }
  0x21   :  { %v1015_v14 = vld [vmem:[#allocation2 + $0x18] sm:$0xff]   ;;  %v1017_v16 = vld [vmem:[#allocation2 + $0x20] sm:$0xff]   ;;  %v1019_v18 = vld [vmem:[#allocation2 + $0x28] sm:$0xff]  }
  0x22   :  { %903 = vmatpush3.bf16.msra.mxu0 %v1002_v1  ;;  %989 = vmatpush3.bf16.msra.mxu1 %v1002_v1  ;;  %v1016_v15 = vld [vmem:[#allocation2 + $0x98] sm:$0xff]   ;;  %v1018_v17 = vld [vmem:[#allocation2 + $0xa0] sm:$0xff]   ;;  %v1020_v19 = vld [vmem:[#allocation2 + $0xa8] sm:$0xff]  }
  0x23   :  { %904 = vmatprep.subr.bf16.mxu0 %v1003_v2  ;;  %982 = vmatprep.subr.bf16.mxu1 %v1003_v2  ;;  %v1021_v20 = vld [vmem:[#allocation2 + $0x30] sm:$0xff]   ;;  %v1023_v22 = vld [vmem:[#allocation2 + $0x38] sm:$0xff]   ;;  %v1025_v24 = vld [vmem:[#allocation2 + $0x40] sm:$0xff]  }
  0x24   :  { %v1022_v21 = vld [vmem:[#allocation2 + $0xb0] sm:$0xff]   ;;  %v1024_v23 = vld [vmem:[#allocation2 + $0xb8] sm:$0xff]   ;;  %v1026_v25 = vld [vmem:[#allocation2 + $0xc0] sm:$0xff]  }
  0x25   :  { %v1027_v26 = vld [vmem:[#allocation2 + $0x48] sm:$0xff]   ;;  %v1029_v28 = vld [vmem:[#allocation2 + $0x50] sm:$0xff]   ;;  %v1031_v30 = vld [vmem:[#allocation2 + $0x58] sm:$0xff]  }
  0x26   :  { %905 = vmatpush3.bf16.msra.mxu0 %v1003_v2  ;;  %990 = vmatpush3.bf16.msra.mxu1 %v1003_v2  ;;  %v1028_v27 = vld [vmem:[#allocation2 + $0xc8] sm:$0xff]   ;;  %v1030_v29 = vld [vmem:[#allocation2 + $0xd0] sm:$0xff]   ;;  %v1032_v31 = vld [vmem:[#allocation2 + $0xd8] sm:$0xff]  }
  0x27   :  { %906 = vmatprep.subr.bf16.mxu0 %v1004_v3  ;;  %983 = vmatprep.subr.bf16.mxu1 %v1004_v3  ;;  %v1033_v32 = vld [vmem:[#allocation2 + $0x60] sm:$0xff]   ;;  %v1035_v34 = vld [vmem:[#allocation2 + $0x68] sm:$0xff]   ;;  %v1037_v36 = vld [vmem:[#allocation2 + $0x70] sm:$0xff]  }
  0x28   :  { %v1034_v33 = vld [vmem:[#allocation2 + $0xe0] sm:$0xff]   ;;  %v1036_v35 = vld [vmem:[#allocation2 + $0xe8] sm:$0xff]   ;;  %v1038_v37 = vld [vmem:[#allocation2 + $0xf0] sm:$0xff]  }
  0x29   :  { %v1039_v38 = vld [vmem:[#allocation2 + $0x78] sm:$0xff]  }
  0x2a   :  { %907 = vmatpush3.bf16.msra.mxu0 %v1004_v3  ;;  %991 = vmatpush3.bf16.msra.mxu1 %v1004_v3  ;;  %v1040_v39 = vld [vmem:[#allocation2 + $0xf8] sm:$0xff]  }
  0x2b   :  { %908 = vmatprep.subr.bf16.mxu0 %v1005_v6  ;;  %984 = vmatprep.subr.bf16.mxu1 %v1005_v6 }
  0x2e   :  { %909 = vmatpush3.bf16.msra.mxu0 %v1005_v6  ;;  %992 = vmatpush3.bf16.msra.mxu1 %v1005_v6 }
  0x2f   :  { %910 = vmatprep.subr.bf16.mxu0 %v1006_v7  ;;  %985 = vmatprep.subr.bf16.mxu1 %v1006_v7 }
  0x32   :  { %911 = vmatpush3.bf16.msra.mxu0 %v1006_v7  ;;  %993 = vmatpush3.bf16.msra.mxu1 %v1006_v7 }
  0x33   :  { %912 = vmatprep.subr.bf16.mxu0 %v1007_v8  ;;  %986 = vmatprep.subr.bf16.mxu1 %v1007_v8 }
  0x36   :  { %913 = vmatpush3.bf16.msra.mxu0 %v1007_v8  ;;  %994 = vmatpush3.bf16.msra.mxu1 %v1007_v8 }
  0x37   :  { %914 = vmatprep.subr.bf16.mxu0 %v1008_v9  ;;  %987 = vmatprep.subr.bf16.mxu1 %v1008_v9 }
  0x3a   :  { %915 = vmatpush3.bf16.msra.mxu0 %v1008_v9  ;;  %995 = vmatpush3.bf16.msra.mxu1 %v1008_v9 }
  0x3d   :  { %917 = vmatmul.mubr.bf16.vlgmr.msra.gmra.mxu0 %v1011_v10  ;;  %949 = vmatmul.mubr.bf16.vlgmr.msra.gmra.mxu1 %v1012_v11 }
  0x3e   :  { %920 = vmatprep.mubr.bf16.mxu0 %v1013_v12  ;;  %952 = vmatprep.mubr.bf16.mxu1 %v1014_v13 }
  0x45   :  { %921 = vmatmul.mubr.bf16.gmra.mxu0 %v1015_v14  ;;  %953 = vmatmul.mubr.bf16.gmra.mxu1 %v1016_v15 }
  0x46   :  { %924 = vmatprep.mubr.bf16.mxu0 %v1017_v16  ;;  %956 = vmatprep.mubr.bf16.mxu1 %v1018_v17 }
  0x4d   :  { %925 = vmatmul.mubr.bf16.gmra.mxu0 %v1019_v18  ;;  %957 = vmatmul.mubr.bf16.gmra.mxu1 %v1020_v19 }
  0x4e   :  { %928 = vmatprep.mubr.bf16.mxu0 %v1021_v20  ;;  %960 = vmatprep.mubr.bf16.mxu1 %v1022_v21 }
  0x55   :  { %929 = vmatmul.mubr.bf16.gmra.mxu0 %v1023_v22  ;;  %961 = vmatmul.mubr.bf16.gmra.mxu1 %v1024_v23 }
  0x56   :  { %932 = vmatprep.mubr.bf16.mxu0 %v1025_v24  ;;  %964 = vmatprep.mubr.bf16.mxu1 %v1026_v25 }
  0x5d   :  { %933 = vmatmul.mubr.bf16.gmra.mxu0 %v1027_v26  ;;  %965 = vmatmul.mubr.bf16.gmra.mxu1 %v1028_v27 }
  0x5e   :  { %936 = vmatprep.mubr.bf16.mxu0 %v1029_v28  ;;  %968 = vmatprep.mubr.bf16.mxu1 %v1030_v29 }
  0x65   :  { %937 = vmatmul.mubr.bf16.gmra.mxu0 %v1031_v30  ;;  %969 = vmatmul.mubr.bf16.gmra.mxu1 %v1032_v31 }
  0x66   :  { %940 = vmatprep.mubr.bf16.mxu0 %v1033_v32  ;;  %972 = vmatprep.mubr.bf16.mxu1 %v1034_v33 }
  0x6d   :  { %941 = vmatmul.mubr.bf16.gmra.mxu0 %v1035_v34  ;;  %973 = vmatmul.mubr.bf16.gmra.mxu1 %v1036_v35 }
  0x6e   :  { %944 = vmatprep.mubr.bf16.mxu0 %v1037_v36  ;;  %976 = vmatprep.mubr.bf16.mxu1 %v1038_v37 }
  0x75   :  { %945 = vmatmul.mubr.bf16.gmra.mxu0 %v1039_v38  ;;  %977 = vmatmul.mubr.bf16.gmra.mxu1 %v1040_v39 }
  0xfd   :  { %v918_v40 = vpop.f32.mrf.mxu0  ;;  %v950_v41 = vpop.f32.mrf.mxu1 }
  0xff   :  { %v398_v42 = vpop.f32.mrf.mxu0  ;;  %v526_v43 = vpop.f32.mrf.mxu1 }
 0x101   :  { %v919_v44 = vpop.f32.mrf.mxu0  ;;  %v951_v45 = vpop.f32.mrf.mxu1 }
 0x103   :  { %v401_v46 = vpop.f32.mrf.mxu0  ;;  %v529_v47 = vpop.f32.mrf.mxu1 }
 0x104   :  { %v705_v6 = vmax.f32 %v526_v43, %v529_v47  ;;  %v653_v9 = vmax.f32 %v398_v42, %v401_v46 }
 0x105   :  { %v1138_v48 = vpop.f32.mrf.mxu0  ;;  %v1140_v49 = vpop.f32.mrf.mxu1 }
 0x106   :  { %v706_v14 = vmax.f32 %v705_v6, %v950_v41  ;;  %v654_v17 = vmax.f32 %v653_v9, %v918_v40 }
 0x107   :  { %v414_v50 = vpop.f32.mrf.mxu0  ;;  %v542_v51 = vpop.f32.mrf.mxu1 }
 0x108   :  { %v707_v22 = vmax.f32 %v706_v14, %v951_v45  ;;  %v655_v25 = vmax.f32 %v654_v17, %v919_v44 }
 0x109   :  { %v1142_v52 = vpop.f32.mrf.mxu0  ;;  %v1144_v53 = vpop.f32.mrf.mxu1 }
 0x10a   :  { %v708_v32 = vmax.f32 %v707_v22, %v542_v51  ;;  %v656_v35 = vmax.f32 %v655_v25, %v414_v50 }
 0x10b   :  { %v1146_v54 = vpop.f32.mrf.mxu0  ;;  %v1148_v55 = vpop.f32.mrf.mxu1 }
 0x10c   :  { %v709_v44 = vmax.f32 %v708_v32, %v1148_v55  ;;  %v657_v47 = vmax.f32 %v656_v35, %v1146_v54 }
 0x10d   :  { %v926_v56 = vpop.f32.mrf.mxu0  ;;  %v958_v57 = vpop.f32.mrf.mxu1 }
 0x10f   :  { %v430_v58 = vpop.f32.mrf.mxu0  ;;  %v558_v59 = vpop.f32.mrf.mxu1 }
 0x111   :  { %v927_v60 = vpop.f32.mrf.mxu0  ;;  %v959_v61 = vpop.f32.mrf.mxu1 }
 0x113   :  { %v433_v62 = vpop.f32.mrf.mxu0  ;;  %v561_v63 = vpop.f32.mrf.mxu1 }
 0x114   :  { %v666_v0 = vmax.f32 %v430_v58, %v433_v62  ;;  %v718_v10 = vmax.f32 %v558_v59, %v561_v63  ;;  %v710_v62 = vmax.f32 %v709_v44, %v1140_v49 }
 0x115   :  { %v930_v1 = vpop.f32.mrf.mxu0  ;;  %v962_v2 = vpop.f32.mrf.mxu1 }
 0x116   :  { %v667_v5 = vmax.f32 %v666_v0, %v926_v56  ;;  %v719_v18 = vmax.f32 %v718_v10, %v958_v57  ;;  %v711_v10 = vmax.f32 %v710_v62, %v1144_v53 }
 0x117   :  { %v446_v3 = vpop.f32.mrf.mxu0  ;;  %v574_v4 = vpop.f32.mrf.mxu1 }
 0x118   :  { %v668_v13 = vmax.f32 %v667_v5, %v927_v60  ;;  %v720_v26 = vmax.f32 %v719_v18, %v959_v61  ;;  %v712_v18 = vrot.slane %v711_v10, 4 }
 0x119   :  { %v931_v7 = vpop.f32.mrf.mxu0  ;;  %v1150_v8 = vpop.f32.mrf.mxu1 }
 0x11a   :  { %v669_v21 = vmax.f32 %v668_v13, %v446_v3  ;;  %v721_v36 = vmax.f32 %v720_v26, %v574_v4 }
 0x11b   :  { %v449_v11 = vpop.f32.mrf.mxu0  ;;  %v577_v12 = vpop.f32.mrf.mxu1 }
 0x11c   :  { %v670_v29 = vmax.f32 %v669_v21, %v449_v11  ;;  %v722_v56 = vmax.f32 %v721_v36, %v577_v12 }
 0x11d   :  { %v934_v15 = vpop.f32.mrf.mxu0  ;;  %v966_v16 = vpop.f32.mrf.mxu1 }
 0x11e   :  { %v671_v41 = vmax.f32 %v670_v29, %v930_v1  ;;  %v658_v1 = vmax.f32 %v657_v47, %v1138_v48  ;;  %v723_v3 = vmax.f32 %v722_v56, %v962_v2  ;;  %v713_v29 = vmax.f32 %v711_v10, %v712_v18 }
 0x11f   :  { %v462_v19 = vpop.f32.mrf.mxu0  ;;  %v590_v20 = vpop.f32.mrf.mxu1 }
 0x120   :  { %v672_v50 = vmax.f32 %v671_v41, %v931_v7  ;;  %v659_v7 = vmax.f32 %v658_v1, %v1142_v52  ;;  %v724_v13 = vmax.f32 %v723_v3, %v1150_v8 }
 0x121   :  { %v935_v23 = vpop.f32.mrf.mxu0  ;;  %v967_v24 = vpop.f32.mrf.mxu1 }
 0x122   :  { %v673_v54 = vrot.slane %v672_v50, 4  ;;  %v660_v22 = vrot.slane %v659_v7, 4 }
 0x123   :  { %v465_v27 = vpop.f32.mrf.mxu0  ;;  %v593_v28 = vpop.f32.mrf.mxu1 }
 0x124   :  { %v679_v30 = vmax.f32 %v462_v19, %v465_v27  ;;  %v731_v31 = vmax.f32 %v590_v20, %v593_v28  ;;  %v674_v48 = vmax.f32 %v672_v50, %v673_v54 }
 0x125   :  { %v938_v33 = vpop.f32.mrf.mxu0  ;;  %v970_v34 = vpop.f32.mrf.mxu1 }
 0x126   :  { %v680_v37 = vmax.f32 %v679_v30, %v934_v15  ;;  %v732_v38 = vmax.f32 %v731_v31, %v966_v16  ;;  %v675_v27 = vrot.slane %v674_v48, 2 }
 0x127   :  { %v478_v39 = vpop.f32.mrf.mxu0  ;;  %v606_v40 = vpop.f32.mrf.mxu1 }
 0x128   :  { %v681_v42 = vmax.f32 %v680_v37, %v935_v23  ;;  %v733_v43 = vmax.f32 %v732_v38, %v967_v24  ;;  %v725_v23 = vrot.slane %v724_v13, 4 }
 0x129   :  { %v939_v45 = vpop.f32.mrf.mxu0  ;;  %v971_v46 = vpop.f32.mrf.mxu1 }
 0x12a   :  { %v682_v57 = vmax.f32 %v681_v42, %v478_v39  ;;  %v734_v51 = vmax.f32 %v733_v43, %v606_v40  ;;  %v676_v40 = vmax.f32 %v674_v48, %v675_v27  ;;  %v714_v43 = vrot.slane %v713_v29, 2 }
 0x12b   :  { %v481_v58 = vpop.f32.mrf.mxu0  ;;  %v609_v59 = vpop.f32.mrf.mxu1 }
 0x12c   :  { %v683_v60 = vmax.f32 %v682_v57, %v481_v58  ;;  %v735_v61 = vmax.f32 %v734_v51, %v609_v59  ;;  %v677_v51 = vrot.slane %v676_v40, 1  ;;  %v715_v50 = vmax.f32 %v713_v29, %v714_v43 }
 0x12d   :  { %v942_v63 = vpop.f32.mrf.mxu0  ;;  %v974_v0 = vpop.f32.mrf.mxu1 }
 0x12e   :  { %v684_v55 = vmax.f32 %v683_v60, %v938_v33  ;;  %v736_v4 = vmax.f32 %v735_v61, %v970_v34  ;;  %v661_v33 = vmax.f32 %v659_v7, %v660_v22  ;;  %v726_v34 = vmax.f32 %v724_v13, %v725_v23 }
 0x12f   :  { %v494_v5 = vpop.f32.mrf.mxu0  ;;  %v622_v6 = vpop.f32.mrf.mxu1  ;;  %v678_v3 = vmax.f32 %v676_v40, %v677_v51 }
 0x130   :  { %v685_v9 = vmax.f32 %v684_v55, %v939_v45  ;;  %v737_v14 = vmax.f32 %v736_v4, %v971_v46  ;;  %v662_v45 = vrot.slane %v661_v33, 2  ;;  %v727_v46 = vrot.slane %v726_v34, 2 }
 0x131   :  { %v943_v11 = vpop.f32.mrf.mxu0  ;;  %v975_v12 = vpop.f32.mrf.mxu1 }
 0x132   :  { %v686_v49 = vrot.slane %v685_v9, 4  ;;  %v738_v25 = vrot.slane %v737_v14, 4  ;;  %v663_v61 = vmax.f32 %v661_v33, %v662_v45  ;;  %v728_v62 = vmax.f32 %v726_v34, %v727_v46 }
 0x133   :  { %v497_v15 = vpop.f32.mrf.mxu0  ;;  %v625_v16 = vpop.f32.mrf.mxu1 }
 0x134   :  { %v692_v2 = vmax.f32 %v494_v5, %v497_v15  ;;  %v744_v17 = vmax.f32 %v622_v6, %v625_v16  ;;  %v687_v19 = vmax.f32 %v685_v9, %v686_v49  ;;  %v739_v37 = vmax.f32 %v737_v14, %v738_v25 }
 0x135   :  { %v946_v20 = vpop.f32.mrf.mxu0  ;;  %v978_v21 = vpop.f32.mrf.mxu1  ;;  %v716_v5 = vrot.slane %v715_v50, 1  ;;  %v664_v54 = vrot.slane %v663_v61, 1  ;;  %v729_v9 = vrot.slane %v728_v62, 1 }
 0x136   :  { %v693_v53 = vmax.f32 %v692_v2, %v942_v63  ;;  %v745_v24 = vmax.f32 %v744_v17, %v974_v0  ;;  %v688_v30 = vrot.slane %v687_v19, 2  ;;  %v740_v57 = vrot.slane %v739_v37, 2 }
 0x137   :  { %v510_v26 = vpop.f32.mrf.mxu0  ;;  %v638_v52 = vpop.f32.mrf.mxu1  ;;  %v717_v15 = vmax.f32 %v715_v50, %v716_v5  ;;  %v665_v48 = vmax.f32 %v663_v61, %v664_v54  ;;  %v730_v2 = vmax.f32 %v728_v62, %v729_v9 }
 0x138   :  { %v694_v8 = vmax.f32 %v693_v53, %v943_v11  ;;  %v746_v28 = vmax.f32 %v745_v24, %v975_v12  ;;  %v689_v44 = vmax.f32 %v687_v19, %v688_v30  ;;  %v741_v1 = vmax.f32 %v739_v37, %v740_v57  ;;  %v859_v12 = vld [vmem:[%s1167_s2] ss:$0 sm:$0xff]  ;;  %s1111_s2 = smov [#allocation7]  }
 0x139   :  { %v947_v31 = vpop.f32.mrf.mxu0  ;;  %v979_v32 = vpop.f32.mrf.mxu1  ;;  %v765_v13 = vadd.f32 %v859_v12, %v678_v3  ;;  %v768_v23 = vadd.f32 %v859_v12, %v717_v15  ;;  %v764_v24 = vadd.f32 %v859_v12, %v665_v48  ;;  %s809_s24 = sshll.u32 %s1111_s2, 4  ;;  %s810_s24 = int_to_ptr.vmem [resolvable:$true] %s809_s24 }
 0x13a   :  { %v695_v35 = vmax.f32 %v694_v8, %v510_v26  ;;  %v747_v36 = vmax.f32 %v746_v28, %v638_v52  ;;  %v690_v60 = vrot.slane %v689_v44, 1  ;;  %v742_v7 = vrot.slane %v741_v1, 1  ;;  %s1081_s25 = scalar_lea.vmem %s810_s24, 128  ;;  %p1086_p11 = scmp.lt.s32.totalorder %s810_s24, %s810_s24 }
 0x13b   :  { %v513_v38 = vpop.f32.mrf.mxu0  ;;  %v641_v39 = vpop.f32.mrf.mxu1  ;;  %v769_v26 = vadd.f32 %v859_v12, %v730_v2  ;;  %v789_v29 = vrot.slane %v768_v23, 4  ;;  %p1082_p10 = scmp.ne.s32.totalorder %s810_s24, %s1081_s25  ;;  %p1087_p12 = scmp.lt.s32.totalorder %s1081_s25, %s1081_s25 }
 0x13c   :  { %v696_v41 = vmax.f32 %v695_v35, %v513_v38  ;;  %v748_v42 = vmax.f32 %v747_v36, %v641_v39  ;;  %v691_v6 = vmax.f32 %v689_v44, %v690_v60  ;;  %v743_v19 = vmax.f32 %v741_v1, %v742_v7 }
 0x13d   :  { %p1088_p13 = por %p1087_p12, %p1086_p11 }
 0x13e   :  { %v697_v47 = vmax.f32 %v696_v41, %v946_v20  ;;  %v749_v56 = vmax.f32 %v748_v42, %v978_v21  ;;  %v766_v16 = vadd.f32 %v859_v12, %v691_v6  ;;  %v780_v20 = vrot.slane %v765_v13, 7 }
 0x13f   :  { %v770_v52 = vadd.f32 %v859_v12, %v743_v19  ;;  %p1089_p0 = pnand %p1088_p13, %p1082_p10 }
 0x140   :  { %v698_v58 = vmax.f32 %v697_v47, %v947_v31  ;;  %v750_v59 = vmax.f32 %v749_v56, %v979_v32  ;;  %v783_v53 = vrot.slane %v766_v16, 6  ;;  %v782_v28 = vsel %vm781_vm0, %v780_v20, %v764_v24 }
 0x141   :  { %v792_v32 = vrot.slane %v769_v26, 3  ;;  %v795_v34 = vrot.slane %v770_v52, 2 }
 0x142   :  { %v699_v63 = vrot.slane %v698_v58, 4  ;;  %v751_v0 = vrot.slane %v750_v59, 4  ;;  %v785_v30 = vsel %vm784_vm1, %v783_v53, %v782_v28 }
 0x144   :  { %v700_v55 = vmax.f32 %v698_v58, %v699_v63  ;;  %v752_v4 = vmax.f32 %v750_v59, %v751_v0 }
 0x146   :  { %v701_v10 = vrot.slane %v700_v55, 2  ;;  %v753_v11 = vrot.slane %v752_v4, 2 }
 0x148   :  { %v702_v49 = vmax.f32 %v700_v55, %v701_v10  ;;  %v754_v14 = vmax.f32 %v752_v4, %v753_v11 }
 0x14a   :  { %v703_v17 = vrot.slane %v702_v49, 1  ;;  %v755_v18 = vrot.slane %v754_v14, 1 }
 0x14c   :  { %v704_v21 = vmax.f32 %v702_v49, %v703_v17  ;;  %v756_v22 = vmax.f32 %v754_v14, %v755_v18 }
 0x14e   :  { %v767_v25 = vadd.f32 %v859_v12, %v704_v21  ;;  %v771_v8 = vadd.f32 %v859_v12, %v756_v22 }
 0x150   :  { %v786_v27 = vrot.slane %v767_v25, 5  ;;  %v798_v36 = vrot.slane %v771_v8, 1 }
 0x152   :  { %v788_v31 = vsel %vm787_vm2, %v786_v27, %v785_v30 }
 0x153   :  { %v791_v33 = vsel %vm790_vm3, %v789_v29, %v788_v31 }
 0x154   :  { %v794_v35 = vsel %vm793_vm4, %v792_v32, %v791_v33 }
 0x155   :  { %v797_v37 = vsel %vm796_vm5, %v795_v34, %v794_v35 }
 0x156   :  { %v800_v38 = vsel %vm799_vm6, %v798_v36, %v797_v37 }
 0x157   :  { %802 = vst [vmem:[#allocation7] sm:$0xff] %v800_v38 }
 0x158   :  { %1092 = shalt.err (!%p1089_p0)
}
 0x159   :  { %812 = dma.vmem_to_hbm [thread:$0]  %s810_s24, 128, %s1168_s3, [#allocation4]  }
 0x15a   :  { %1105 = dma.done.wait [#allocation4], 128  }
 0x15b   :  { %1106 = vsyncadd [#allocation4], 4294967168 }
 0x15c   :  { %816 = vsyncpa [#allocation3], 1 }
 0x15d   :  { %817 = vsyncpa [#allocation6], 1 }
 0x15e   :  { %818 = vsyncpa [#allocation4], 1 }

</bundles_post_ra>
